<compile_context>
chip_gen: v5e
topology: v5e:2x2
jax: 0.10.0
libtpu: 0.0.40
codegen_flags: <defaults>
</compile_context>

<pallas_src>
import numpy as np
import jax
import jax.numpy as jnp
from jax.experimental import pallas as pl
from jax.experimental.pallas import tpu as pltpu

# ---- torchaudio.compliance.kaldi.mfcc default parameters ----
SAMPLE_RATE = 16000
WINDOW_SIZE = int(SAMPLE_RATE * 25.0 / 1000)       # 400 (frame_length = 25 ms)
WINDOW_SHIFT = int(SAMPLE_RATE * 10.0 / 1000)      # 160 (frame_shift = 10 ms)
PADDED_WINDOW = 512                                # round_to_power_of_two(400)
NUM_BINS = PADDED_WINDOW // 2                      # 256 rfft bins kept (Nyquist dropped:
                                                   # its mel-bank column is all-zero)
NUM_MEL_BINS = 23
NUM_CEPS = 13
NUM_FEATS = 3 * NUM_CEPS                           # 39 (mfcc, delta, delta-delta)
OUT_LANES = 128                                    # lane-dense output block width
LOW_FREQ = 20.0
HIGH_FREQ = SAMPLE_RATE / 2.0                      # high_freq=0.0 -> + nyquist
PREEMPH = 0.97
CEPSTRAL_LIFTER = 22.0
KALDI_EPS = float(np.finfo(np.float32).eps)        # torch.finfo(torch.float).eps
NORM_EPS = 1e-9
DELTA_WIN = 5
TILE_T_MAX = 256                                   # frames per grid step


# ----------------------------- constant builders (host glue) -------------------------
def _povey_window():
    i = np.arange(WINDOW_SIZE, dtype=np.float64)
    hann = 0.5 - 0.5 * np.cos(2.0 * np.pi * i / (WINDOW_SIZE - 1))
    return hann ** 0.85


def _folded_dft_matrices():
    """(400, 256) real/imag DFT matrices with the Povey window, kaldi preemphasis
    (replicate left pad) and per-frame DC-offset removal folded in as one exact
    linear operator: re/im = frames @ C."""
    n = np.arange(WINDOW_SIZE, dtype=np.float64)[:, None]
    k = np.arange(NUM_BINS, dtype=np.float64)[None, :]
    ang = 2.0 * np.pi * n * k / PADDED_WINDOW
    w = _povey_window()[:, None]                               # (400, 1)
    mats = []
    for M in (w * np.cos(ang), w * (-np.sin(ang))):            # windowed DFT rows
        C = M.copy()
        # preemphasis: y[m] = x'[m] - p * x'[max(m-1, 0)]
        #   contribution of x'[n] = M[n] - p * sum_{m: max(m-1,0)=n} M[m]
        C[0, :] -= PREEMPH * (M[0, :] + M[1, :])
        C[1:WINDOW_SIZE - 1, :] -= PREEMPH * M[2:WINDOW_SIZE, :]
        # remove_dc_offset: x'[n] = x[n] - mean(x)  (rank-1 correction)
        C -= C.sum(axis=0, keepdims=True) / WINDOW_SIZE
        mats.append(C.astype(np.float32))
    return mats                                                 # cos-like, sin-like


def _mel_scale(f):
    return 1127.0 * np.log(1.0 + f / 700.0)


def _mel_banks():
    # kaldi get_mel_banks (vtln_warp=1.0) for fft bins 0..255 -> (256, 23)
    fft_bin_width = SAMPLE_RATE / PADDED_WINDOW
    mel_low = _mel_scale(LOW_FREQ)
    mel_high = _mel_scale(HIGH_FREQ)
    mel_delta = (mel_high - mel_low) / (NUM_MEL_BINS + 1)
    b = np.arange(NUM_MEL_BINS, dtype=np.float64)[:, None]
    left = mel_low + b * mel_delta
    center = mel_low + (b + 1.0) * mel_delta
    right = mel_low + (b + 2.0) * mel_delta
    mel = _mel_scale(fft_bin_width * np.arange(NUM_BINS, dtype=np.float64))[None, :]
    up = (mel - left) / (center - left)
    down = (right - mel) / (right - center)
    fb = np.maximum(0.0, np.minimum(up, down))                 # (23, 256)
    return fb.T.astype(np.float32)                             # (256, 23)


def _fused_output_matrix():
    """(23, 128) constant = ortho-DCT(kaldi C0) * lifter, fused with the two
    compute_deltas operators (applied along the cepstral axis, as in the reference)
    and zero-padded from 39 to 128 lanes for an unmasked output store."""
    n = np.arange(NUM_MEL_BINS, dtype=np.float64)[:, None]
    k = np.arange(NUM_CEPS, dtype=np.float64)[None, :]
    dct = np.sqrt(2.0 / NUM_MEL_BINS) * np.cos(np.pi / NUM_MEL_BINS * (n + 0.5) * k)
    dct[:, 0] = np.sqrt(1.0 / NUM_MEL_BINS)
    i = np.arange(NUM_CEPS, dtype=np.float64)
    lifter = 1.0 + 0.5 * CEPSTRAL_LIFTER * np.sin(np.pi * i / CEPSTRAL_LIFTER)
    dctl = dct * lifter[None, :]                               # (23, 13)

    # torchaudio.functional.compute_deltas(win_length=5, mode="replicate") as a
    # linear operator along the last axis of the (T, 13) tensor.
    nw = (DELTA_WIN - 1) // 2
    denom = nw * (nw + 1) * (2 * nw + 1) / 3.0
    D = np.zeros((NUM_CEPS, NUM_CEPS), dtype=np.float64)
    for j in range(NUM_CEPS):
        for d in range(-nw, nw + 1):
            src = min(max(j + d, 0), NUM_CEPS - 1)
            D[src, j] += d / denom

    fused = np.concatenate([dctl, dctl @ D, dctl @ D @ D], axis=1)   # (23, 39)
    out = np.zeros((NUM_MEL_BINS, OUT_LANES), dtype=np.float64)
    out[:, :NUM_FEATS] = fused
    return out.astype(np.float32)                               # (23, 128)


# ----------------------------------- Pallas kernel -----------------------------------
def _mfcc_kernel(frames_ref, cos_ref, sin_ref, mel_ref, outm_ref, out_ref):
    x = frames_ref[...]                                         # (TILE_T, 400) f32
    # DC-removal + preemphasis + Povey window + 512-pt rfft (Nyquist dropped), all
    # folded into the two constant matrices -> two MXU matmuls.
    re = jnp.dot(x, cos_ref[...], preferred_element_type=jnp.float32)   # (TILE_T, 256)
    im = jnp.dot(x, sin_ref[...], preferred_element_type=jnp.float32)
    power = re * re + im * im                                   # lane-dense (TILE_T, 256)

    mel = jnp.dot(power, mel_ref[...], preferred_element_type=jnp.float32)  # (TILE_T, 23)
    logmel = jnp.log(jnp.maximum(mel, KALDI_EPS))

    # DCT + lifter + delta + delta-delta fused into one lane-dense output matmul.
    out_ref[...] = jnp.dot(logmel, outm_ref[...],
                           preferred_element_type=jnp.float32)  # (TILE_T, 128)


# ------------------------------------- wrapper ---------------------------------------
def mfcc_transform(waveform, sr=16000):
    """waveform: (channels, num_samples) float32; returns (num_frames, 39) float32."""
    assert sr == SAMPLE_RATE
    wave = waveform[0].astype(jnp.float32)                      # channel=-1 -> channel 0
    num_samples = wave.shape[0]
    num_frames = 1 + (num_samples - WINDOW_SIZE) // WINDOW_SHIFT   # snip_edges=True

    # framing (glue): frames[i, j] = wave[i*shift + j]
    # TODO(synk): for very long audio, pass the raw waveform with memory_space=pl.ANY
    # and build frames in-kernel via manual DMA to avoid the 2.5x duplicated gather.
    within = jnp.arange(WINDOW_SIZE)
    starts = jnp.arange(num_frames)[:, None] * WINDOW_SHIFT
    frames = wave[starts + within[None, :]]                     # (T, 400)

    # tile the time axis; pad with zero frames (padded rows are sliced off below).
    t_pad8 = -(-num_frames // 8) * 8
    tile_t = min(TILE_T_MAX, t_pad8)
    grid_t = -(-num_frames // tile_t)
    t_pad = grid_t * tile_t
    frames = jnp.pad(frames, ((0, t_pad - num_frames), (0, 0)))

    cos_np, sin_np = _folded_dft_matrices()
    consts = (
        jnp.asarray(cos_np),                                    # (400, 256)
        jnp.asarray(sin_np),                                    # (400, 256)
        jnp.asarray(_mel_banks()),                              # (256, 23)
        jnp.asarray(_fused_output_matrix()),                    # (23, 128)
    )
    const_specs = [pl.BlockSpec(c.shape, lambda i: (0, 0)) for c in consts]

    out = pl.pallas_call(
        _mfcc_kernel,
        out_shape=jax.ShapeDtypeStruct((t_pad, OUT_LANES), jnp.float32),
        grid=(grid_t,),
        in_specs=[pl.BlockSpec((tile_t, WINDOW_SIZE), lambda i: (i, 0))] + const_specs,
        out_specs=pl.BlockSpec((tile_t, OUT_LANES), lambda i: (i, 0)),
        compiler_params=pltpu.CompilerParams(dimension_semantics=("parallel",)),
    )(frames, *consts)

    feat = out[:num_frames, :NUM_FEATS]                         # (T, 39)

    # per-column normalization over time (global reduction over T; done in plain JAX
    # on the tiny (T, 39) result so the kernel stays tiled / pipelined).
    mu = jnp.mean(feat, axis=0, keepdims=True)
    std = jnp.sqrt(jnp.mean((feat - mu) ** 2, axis=0, keepdims=True))  # unbiased=False
    return (feat - mu) / (std + NORM_EPS)


if __name__ == "__main__":
    key = jax.random.PRNGKey(0)
    num_frames = 16
    num_samples = WINDOW_SIZE + WINDOW_SHIFT * (num_frames - 1)   # 2800 samples
    waveform = jax.random.normal(key, (1, num_samples), dtype=jnp.float32)

    out = mfcc_transform(waveform, sr=16000)
    out = jax.block_until_ready(out)

    assert out.shape == (num_frames, NUM_FEATS), out.shape
    assert bool(jnp.all(jnp.isfinite(out)))
    print("KERNEL_OK")
</pallas_src>

<mosaic_0001>
module attributes {stable_mosaic.version = 11 : i64} {
  func.func @_mfcc_kernel(%arg0: i32, %arg1: memref<16x400xf32, #tpu.memory_space<vmem>>, %arg2: memref<400x256xf32, #tpu.memory_space<vmem>>, %arg3: memref<400x256xf32, #tpu.memory_space<vmem>>, %arg4: memref<256x23xf32, #tpu.memory_space<vmem>>, %arg5: memref<23x128xf32, #tpu.memory_space<vmem>>, %arg6: memref<16x128xf32, #tpu.memory_space<vmem>>) attributes {dimension_semantics = [#tpu.dimension_semantics<parallel>], iteration_bounds = array<i64: 1>, scalar_prefetch = 0 : i64, scratch_operands = 0 : i64, tpu.core_type = #tpu.core_type<tc>, window_params = [{transform_indices = @transform_0, window_bounds = array<i64: 16, 400>}, {pipeline_mode = #tpu.pipeline_mode<synchronous>, transform_indices = @transform_1, window_bounds = array<i64: 400, 256>}, {pipeline_mode = #tpu.pipeline_mode<synchronous>, transform_indices = @transform_2, window_bounds = array<i64: 400, 256>}, {pipeline_mode = #tpu.pipeline_mode<synchronous>, transform_indices = @transform_3, window_bounds = array<i64: 256, 23>}, {pipeline_mode = #tpu.pipeline_mode<synchronous>, transform_indices = @transform_4, window_bounds = array<i64: 23, 128>}, {transform_indices = @transform_5, window_bounds = array<i64: 16, 128>}]} {
    %c0 = arith.constant 0 : index
    %c0_0 = arith.constant 0 : index
    %0 = vector.load %arg1[%c0, %c0_0] : memref<16x400xf32, #tpu.memory_space<vmem>>, vector<16x400xf32>
    %c0_1 = arith.constant 0 : index
    %c0_2 = arith.constant 0 : index
    %1 = vector.load %arg2[%c0_1, %c0_2] : memref<400x256xf32, #tpu.memory_space<vmem>>, vector<400x256xf32>
    %cst = arith.constant dense<0.000000e+00> : vector<16x256xf32>
    %2 = tpu.matmul %0, %1, %cst {dimension_numbers = #tpu.dot_dimension_numbers<[1], [0], [0], [1], [0, 0, 1, 1], [], []>} : vector<16x400xf32>, vector<400x256xf32>, vector<16x256xf32> -> vector<16x256xf32>
    %c0_3 = arith.constant 0 : index
    %c0_4 = arith.constant 0 : index
    %3 = vector.load %arg3[%c0_3, %c0_4] : memref<400x256xf32, #tpu.memory_space<vmem>>, vector<400x256xf32>
    %cst_5 = arith.constant dense<0.000000e+00> : vector<16x256xf32>
    %4 = tpu.matmul %0, %3, %cst_5 {dimension_numbers = #tpu.dot_dimension_numbers<[1], [0], [0], [1], [0, 0, 1, 1], [], []>} : vector<16x400xf32>, vector<400x256xf32>, vector<16x256xf32> -> vector<16x256xf32>
    %5 = arith.mulf %2, %2 : vector<16x256xf32>
    %6 = arith.mulf %4, %4 : vector<16x256xf32>
    %7 = arith.addf %5, %6 : vector<16x256xf32>
    %c0_6 = arith.constant 0 : index
    %c0_7 = arith.constant 0 : index
    %8 = vector.load %arg4[%c0_6, %c0_7] : memref<256x23xf32, #tpu.memory_space<vmem>>, vector<256x23xf32>
    %cst_8 = arith.constant dense<0.000000e+00> : vector<16x23xf32>
    %9 = tpu.matmul %7, %8, %cst_8 {dimension_numbers = #tpu.dot_dimension_numbers<[1], [0], [0], [1], [0, 0, 1, 1], [], []>} : vector<16x256xf32>, vector<256x23xf32>, vector<16x23xf32> -> vector<16x23xf32>
    %cst_9 = arith.constant 1.1920929E-7 : f32
    %10 = vector.broadcast %cst_9 : f32 to vector<16x23xf32>
    %11 = arith.maximumf %9, %10 : vector<16x23xf32>
    %12 = math.log %11 : vector<16x23xf32>
    %c0_10 = arith.constant 0 : index
    %c0_11 = arith.constant 0 : index
    %13 = vector.load %arg5[%c0_10, %c0_11] : memref<23x128xf32, #tpu.memory_space<vmem>>, vector<23x128xf32>
    %cst_12 = arith.constant dense<0.000000e+00> : vector<16x128xf32>
    %14 = tpu.matmul %12, %13, %cst_12 {dimension_numbers = #tpu.dot_dimension_numbers<[1], [0], [0], [1], [0, 0, 1, 1], [], []>} : vector<16x23xf32>, vector<23x128xf32>, vector<16x128xf32> -> vector<16x128xf32>
    %c0_13 = arith.constant 0 : index
    %c0_14 = arith.constant 0 : index
    %15 = vector.load %arg6[%c0_13, %c0_14] : memref<16x128xf32, #tpu.memory_space<vmem>>, vector<16x128xf32>
    tpu.vector_store %arg6[%c0_13, %c0_14], %14 {strides = array<i32>} : memref<16x128xf32, #tpu.memory_space<vmem>>, vector<16x128xf32>,
    return
  }
  func.func @transform_0(%arg0: i32) -> (i32, i32) {
    %c0_i32 = arith.constant 0 : i32
    %c0_i32_0 = arith.constant 0 : i32
    return %arg0, %c0_i32 : i32, i32
  }
  func.func @transform_1(%arg0: i32) -> (i32, i32) {
    %c0_i32 = arith.constant 0 : i32
    %c0_i32_0 = arith.constant 0 : i32
    %c0_i32_1 = arith.constant 0 : i32
    return %c0_i32, %c0_i32_0 : i32, i32
  }
  func.func @transform_2(%arg0: i32) -> (i32, i32) {
    %c0_i32 = arith.constant 0 : i32
    %c0_i32_0 = arith.constant 0 : i32
    %c0_i32_1 = arith.constant 0 : i32
    return %c0_i32, %c0_i32_0 : i32, i32
  }
  func.func @transform_3(%arg0: i32) -> (i32, i32) {
    %c0_i32 = arith.constant 0 : i32
    %c0_i32_0 = arith.constant 0 : i32
    %c0_i32_1 = arith.constant 0 : i32
    return %c0_i32, %c0_i32_0 : i32, i32
  }
  func.func @transform_4(%arg0: i32) -> (i32, i32) {
    %c0_i32 = arith.constant 0 : i32
    %c0_i32_0 = arith.constant 0 : i32
    %c0_i32_1 = arith.constant 0 : i32
    return %c0_i32, %c0_i32_0 : i32, i32
  }
  func.func @transform_5(%arg0: i32) -> (i32, i32) {
    %c0_i32 = arith.constant 0 : i32
    %c0_i32_0 = arith.constant 0 : i32
    return %arg0, %c0_i32 : i32, i32
  }
}

</mosaic_0001>

<bundles_post_ra>
// kernel: tpu_custom_call.1
= control target key start
LH: loop header
LB: loop body
LE: loop exit
PB: predicated region body
PF: predicated region fallthrough
CT: control target
= control target key end

     0   :  { %10 = vsyncpa [#allocation3], 0  ;;  %s1143_s0 = inlined_call_operand.vmem [shape: f32[16,400], index: 0, kind: input, shape index: {}]   ;;  %s1144_s1 = inlined_call_operand.hbm [shape: f32[400,256], index: 1, kind: input, shape index: {}]   ;;  %s1145_s2 = inlined_call_operand.hbm [shape: f32[400,256], index: 2, kind: input, shape index: {}]   ;;  %s1146_s3 = inlined_call_operand.vmem [shape: f32[256,23], index: 3, kind: input, shape index: {}]   ;;  %s1147_s4 = inlined_call_operand.vmem [shape: f32[23,128], index: 4, kind: input, shape index: {}]   ;;  %s1148_s5 = inlined_call_operand.hbm [shape: f32[16,128], index: 5, kind: output, shape index: {}]  }
   0x1   :  { %11 = vsyncpa [#allocation6], 0 }
   0x2   :  { %12 = vsyncpa [#allocation4], 0  ;;  %s19_s20 = sshll.u32 %s1144_s1, 4  ;;  %s891_s21 = smov [#allocation2]   ;;  %s20_s20 = int_to_ptr.hbm [resolvable:$true] %s19_s20 }
   0x3   :  { %s21_s22 = sshll.u32 %s891_s21, 4  ;;  %s32_s25 = sshll.u32 %s1145_s2, 4  ;;  %s22_s22 = int_to_ptr.vmem [resolvable:$true] %s21_s22  ;;  %s33_s25 = int_to_ptr.hbm [resolvable:$true] %s32_s25 }
   0x4   :  { %s892_s26 = smov 256   ;;  %s893_s27 = smov 16  }
   0x5   :  { %27 = dma.hbm_to_vmem [thread:$0]  %s20_s20, 12800, %s22_s22, [#allocation3], %s892_s26, %s892_s26, %s893_s27  }
   0x6   :  { %s894_s28 = smov [#allocation5]  }
   0x7   :  { %s34_s29 = sshll.u32 %s894_s28, 4  ;;  %s35_s29 = int_to_ptr.vmem [resolvable:$true] %s34_s29 }
   0x8   :  { %40 = dma.hbm_to_vmem [thread:$0]  %s33_s25, 12800, %s35_s29, [#allocation6], %s892_s26, %s892_s26, %s893_s27  }
   0x9   :  { %885 = dma.done.wait [#allocation3], 12800  }
   0xa   :  { %886 = vsyncadd [#allocation3], 4294954496 }
   0xb   :  { %887 = dma.done.wait [#allocation6], 12800  }
   0xc   :  { %888 = vsyncadd [#allocation6], 4294954496  ;;  %v91_v0 = vld [vmem:[#allocation2 + $0xf0] sm:$0xff]  ;;  %v89_v3 = vld [vmem:[#allocation2 + $0xe0] sm:$0xff]  ;;  %vm161_vm0 = vcmask 130048   ;;  %vm742_vm1 = vcmask 1046528  }
   0xd   :  { %v155_v1 = vld [vmem:[#allocation2 + $0x2f0] sm:$0xff]  ;;  %168 = vmatpush.msra.mxu0 %v91_v0  ;;  %v153_v4 = vld [vmem:[#allocation2 + $0x2e0] sm:$0xff]  ;;  %v92_v6 = vld [vmem:[#allocation2 + $0xf8] sm:$0xff]  ;;  %vm735_vm2 = vcmask 187392   ;;  %s777_s7 = sshll.u32 %s1148_s5, 4  ;;  %s896_s8 = smov 128   ;;  %s778_s7 = int_to_ptr.hbm [resolvable:$true] %s777_s7 }
   0xe   :  { %v159_v2 = vld [vmem:[#allocation2 + $0x310] sm:$0xff]  ;;  %214 = vmatpush.msra.mxu2 %v155_v1  ;;  %v157_v5 = vld [vmem:[#allocation2 + $0x300] sm:$0xff]  ;;  %v90_v10 = vld [vmem:[#allocation2 + $0xe8] sm:$0xff]  ;;  %s897_s9 = smov 8  }
   0xf   :  { %251 = vmatpush.msra.mxu3 %v159_v2  ;;  %v87_v7 = vld [vmem:[#allocation2 + $0xd0] sm:$0xff]  ;;  %169 = vmatpush.msra.mxu0 %v89_v3  ;;  %v85_v11 = vld [vmem:[#allocation2 + $0xc0] sm:$0xff]  ;;  %v88_v14 = vld [vmem:[#allocation2 + $0xd8] sm:$0xff] }
  0x10   :  { %215 = vmatpush.msra.mxu2 %v153_v4  ;;  %v151_v8 = vld [vmem:[#allocation2 + $0x2d0] sm:$0xff]  ;;  %v149_v12 = vld [vmem:[#allocation2 + $0x2c0] sm:$0xff]  ;;  %v86_v19 = vld [vmem:[#allocation2 + $0xc8] sm:$0xff] }
  0x11   :  { %v123_v9 = vld [vmem:[#allocation2 + $0x1f0] sm:$0xff]  ;;  %252 = vmatpush.msra.mxu3 %v157_v5  ;;  %170 = vmatpush.msra.mxu0 %v87_v7  ;;  %v121_v13 = vld [vmem:[#allocation2 + $0x1e0] sm:$0xff]  ;;  %v84_v23 = vld [vmem:[#allocation2 + $0xb8] sm:$0xff] }
  0x12   :  { %191 = vmatpush.msra.mxu1 %v123_v9  ;;  %216 = vmatpush.msra.mxu2 %v151_v8  ;;  %v83_v15 = vld [vmem:[#allocation2 + $0xb0] sm:$0xff]  ;;  %v117_v18 = vld [vmem:[#allocation2 + $0x1c0] sm:$0xff]  ;;  %v82_v27 = vld [vmem:[#allocation2 + $0xa8] sm:$0xff] }
  0x13   :  { %260 = vmatpush.msrb.mxu3 %v92_v6  ;;  %v119_v16 = vld [vmem:[#allocation2 + $0x1d0] sm:$0xff]  ;;  %171 = vmatpush.msra.mxu0 %v85_v11  ;;  %v81_v20 = vld [vmem:[#allocation2 + $0xa0] sm:$0xff]  ;;  %v80_v31 = vld [vmem:[#allocation2 + $0x98] sm:$0xff] }
  0x14   :  { %192 = vmatpush.msra.mxu1 %v121_v13  ;;  %v147_v17 = vld [vmem:[#allocation2 + $0x2b0] sm:$0xff]  ;;  %217 = vmatpush.msra.mxu2 %v149_v12  ;;  %v145_v21 = vld [vmem:[#allocation2 + $0x2a0] sm:$0xff]  ;;  %v78_v35 = vld [vmem:[#allocation2 + $0x88] sm:$0xff] }
  0x15   :  { %261 = vmatpush.msrb.mxu3 %v90_v10  ;;  %172 = vmatpush.msra.mxu0 %v83_v15  ;;  %v115_v22 = vld [vmem:[#allocation2 + $0x1b0] sm:$0xff]  ;;  %v113_v26 = vld [vmem:[#allocation2 + $0x1a0] sm:$0xff]  ;;  %v76_v39 = vld [vmem:[#allocation2 + $0x78] sm:$0xff] }
  0x16   :  { %193 = vmatpush.msra.mxu1 %v119_v16  ;;  %218 = vmatpush.msra.mxu2 %v147_v17  ;;  %v79_v24 = vld [vmem:[#allocation2 + $0x90] sm:$0xff]  ;;  %v77_v28 = vld [vmem:[#allocation2 + $0x80] sm:$0xff]  ;;  %v74_v43 = vld [vmem:[#allocation2 + $0x68] sm:$0xff] }
  0x17   :  { %262 = vmatpush.msrb.mxu3 %v88_v14  ;;  %173 = vmatpush.msra.mxu0 %v81_v20  ;;  %v143_v25 = vld [vmem:[#allocation2 + $0x290] sm:$0xff]  ;;  %v141_v29 = vld [vmem:[#allocation2 + $0x280] sm:$0xff]  ;;  %v72_v47 = vld [vmem:[#allocation2 + $0x58] sm:$0xff] }
  0x18   :  { %194 = vmatpush.msra.mxu1 %v117_v18  ;;  %219 = vmatpush.msra.mxu2 %v145_v21  ;;  %v111_v30 = vld [vmem:[#allocation2 + $0x190] sm:$0xff]  ;;  %v109_v34 = vld [vmem:[#allocation2 + $0x180] sm:$0xff]  ;;  %v70_v51 = vld [vmem:[#allocation2 + $0x48] sm:$0xff] }
  0x19   :  { %263 = vmatpush.msrb.mxu3 %v86_v19  ;;  %174 = vmatpush.msra.mxu0 %v79_v24  ;;  %v75_v32 = vld [vmem:[#allocation2 + $0x70] sm:$0xff]  ;;  %v73_v36 = vld [vmem:[#allocation2 + $0x60] sm:$0xff]  ;;  %v68_v55 = vld [vmem:[#allocation2 + $0x38] sm:$0xff] }
  0x1a   :  { %195 = vmatpush.msra.mxu1 %v115_v22  ;;  %220 = vmatpush.msra.mxu2 %v143_v25  ;;  %v139_v33 = vld [vmem:[#allocation2 + $0x270] sm:$0xff]  ;;  %v137_v37 = vld [vmem:[#allocation2 + $0x260] sm:$0xff]  ;;  %v66_v59 = vld [vmem:[#allocation2 + $0x28] sm:$0xff] }
  0x1b   :  { %264 = vmatpush.msrb.mxu3 %v84_v23  ;;  %175 = vmatpush.msra.mxu0 %v77_v28  ;;  %v107_v38 = vld [vmem:[#allocation2 + $0x170] sm:$0xff]  ;;  %v105_v42 = vld [vmem:[#allocation2 + $0x160] sm:$0xff]  ;;  %v124_v62 = vld [vmem:[#allocation2 + $0x1f8] sm:$0xff] }
  0x1c   :  { %196 = vmatpush.msra.mxu1 %v113_v26  ;;  %221 = vmatpush.msra.mxu2 %v141_v29  ;;  %v71_v40 = vld [vmem:[#allocation2 + $0x50] sm:$0xff]  ;;  %v69_v44 = vld [vmem:[#allocation2 + $0x40] sm:$0xff]  ;;  %v64_v63 = vld [vmem:[#allocation2 + $0x18] sm:$0xff] }
  0x1d   :  { %265 = vmatpush.msrb.mxu3 %v82_v27  ;;  %176 = vmatpush.msra.mxu0 %v75_v32  ;;  %v135_v41 = vld [vmem:[#allocation2 + $0x250] sm:$0xff]  ;;  %v133_v45 = vld [vmem:[#allocation2 + $0x240] sm:$0xff]  ;;  %v160_v0 = vld [vmem:[#allocation2 + $0x318] sm:$0xff] }
  0x1e   :  { %197 = vmatpush.msra.mxu1 %v111_v30  ;;  %222 = vmatpush.msra.mxu2 %v139_v33  ;;  %v103_v46 = vld [vmem:[#allocation2 + $0x150] sm:$0xff]  ;;  %v101_v50 = vld [vmem:[#allocation2 + $0x140] sm:$0xff]  ;;  %v122_v1 = vld [vmem:[#allocation2 + $0x1e8] sm:$0xff] }
  0x1f   :  { %266 = vmatpush.msrb.mxu3 %v80_v31  ;;  %177 = vmatpush.msra.mxu0 %v73_v36  ;;  %v67_v48 = vld [vmem:[#allocation2 + $0x30] sm:$0xff]  ;;  %v65_v52 = vld [vmem:[#allocation2 + $0x20] sm:$0xff]  ;;  %v62_v3 = vld [vmem:[#allocation2 + $0x8] sm:$0xff] }
  0x20   :  { %198 = vmatpush.msra.mxu1 %v109_v34  ;;  %223 = vmatpush.msra.mxu2 %v137_v37  ;;  %v131_v49 = vld [vmem:[#allocation2 + $0x230] sm:$0xff]  ;;  %v129_v53 = vld [vmem:[#allocation2 + $0x220] sm:$0xff]  ;;  %v158_v4 = vld [vmem:[#allocation2 + $0x308] sm:$0xff] }
  0x21   :  { %267 = vmatpush.msrb.mxu3 %v78_v35  ;;  %178 = vmatpush.msra.mxu0 %v71_v40  ;;  %v99_v54 = vld [vmem:[#allocation2 + $0x130] sm:$0xff]  ;;  %v97_v58 = vld [vmem:[#allocation2 + $0x120] sm:$0xff]  ;;  %v942_v6 = vld [vmem:[%s1143_s0 + $0x18] sm:$0xff] }
  0x22   :  { %199 = vmatpush.msra.mxu1 %v107_v38  ;;  %224 = vmatpush.msra.mxu2 %v135_v41  ;;  %v63_v56 = vld [vmem:[#allocation2 + $0x10] sm:$0xff]  ;;  %v61_v60 = vld [vmem:[#allocation2] sm:$0xff]  ;;  %v120_v9 = vld [vmem:[#allocation2 + $0x1d8] sm:$0xff] }
  0x23   :  { %268 = vmatpush.msrb.mxu3 %v76_v39  ;;  %179 = vmatpush.msra.mxu0 %v69_v44  ;;  %v127_v57 = vld [vmem:[#allocation2 + $0x210] sm:$0xff]  ;;  %v125_v61 = vld [vmem:[#allocation2 + $0x200] sm:$0xff]  ;;  %v118_v13 = vld [vmem:[#allocation2 + $0x1c8] sm:$0xff] }
  0x24   :  { %200 = vmatpush.msra.mxu1 %v105_v42  ;;  %225 = vmatpush.msra.mxu2 %v133_v45  ;;  %v95_v2 = vld [vmem:[#allocation2 + $0x110] sm:$0xff]  ;;  %v93_v10 = vld [vmem:[#allocation2 + $0x100] sm:$0xff]  ;;  %v156_v14 = vld [vmem:[#allocation2 + $0x2f8] sm:$0xff] }
  0x25   :  { %269 = vmatpush.msrb.mxu3 %v74_v43  ;;  %180 = vmatpush.msra.mxu0 %v67_v48  ;;  %v937_v5 = vld [vmem:[%s1143_s0 + $0x10] sm:$0xff]  ;;  %v380_v11 = vld [vmem:[#allocation5 + $0xe0] sm:$0xff]  ;;  %v955_v16 = vld [vmem:[%s1143_s0 + $0x8] sm:$0xff] }
  0x26   :  { %201 = vmatpush.msra.mxu1 %v103_v46  ;;  %226 = vmatpush.msra.mxu2 %v131_v49  ;;  %v382_v7 = vld [vmem:[#allocation5 + $0xf0] sm:$0xff]  ;;  %v412_v12 = vld [vmem:[#allocation5 + $0x1e0] sm:$0xff]  ;;  %v116_v19 = vld [vmem:[#allocation2 + $0x1b8] sm:$0xff] }
  0x27   :  { %270 = vmatpush.msrb.mxu3 %v72_v47  ;;  %181 = vmatpush.msra.mxu0 %v65_v52  ;;  %v414_v8 = vld [vmem:[#allocation5 + $0x1f0] sm:$0xff]  ;;  %v950_v15 = vld [vmem:[%s1143_s0] sm:$0xff]  ;;  %v154_v20 = vld [vmem:[#allocation2 + $0x2e8] sm:$0xff] }
  0x28   :  { %202 = vmatpush.msra.mxu1 %v101_v50  ;;  %227 = vmatpush.msra.mxu2 %v129_v53  ;;  %v378_v17 = vld [vmem:[#allocation5 + $0xd0] sm:$0xff]  ;;  %v376_v21 = vld [vmem:[#allocation5 + $0xc0] sm:$0xff]  ;;  %v114_v23 = vld [vmem:[#allocation2 + $0x1a8] sm:$0xff] }
  0x29   :  { %271 = vmatpush.msrb.mxu3 %v70_v51  ;;  %182 = vmatpush.msra.mxu0 %v63_v56  ;;  %v410_v18 = vld [vmem:[#allocation5 + $0x1d0] sm:$0xff]  ;;  %v408_v22 = vld [vmem:[#allocation5 + $0x1c0] sm:$0xff]  ;;  %v152_v24 = vld [vmem:[#allocation2 + $0x2d8] sm:$0xff] }
  0x2a   :  { %203 = vmatpush.msra.mxu1 %v99_v54  ;;  %228 = vmatpush.msra.mxu2 %v127_v57  ;;  %v374_v25 = vld [vmem:[#allocation5 + $0xb0] sm:$0xff]  ;;  %v112_v27 = vld [vmem:[#allocation2 + $0x198] sm:$0xff]  ;;  %v150_v28 = vld [vmem:[#allocation2 + $0x2c8] sm:$0xff] }
  0x2b   :  { %272 = vmatpush.msrb.mxu3 %v68_v55  ;;  %183 = vmatpush.msra.mxu0 %v61_v60  ;;  %v406_v26 = vld [vmem:[#allocation5 + $0x1b0] sm:$0xff]  ;;  %v372_v29 = vld [vmem:[#allocation5 + $0xa0] sm:$0xff]  ;;  %v110_v31 = vld [vmem:[#allocation2 + $0x188] sm:$0xff] }
  0x2c   :  { %204 = vmatpush.msra.mxu1 %v97_v58  ;;  %229 = vmatpush.msra.mxu2 %v125_v61  ;;  %v404_v30 = vld [vmem:[#allocation5 + $0x1a0] sm:$0xff]  ;;  %v148_v32 = vld [vmem:[#allocation2 + $0x2b8] sm:$0xff]  ;;  %v370_v33 = vld [vmem:[#allocation5 + $0x90] sm:$0xff] }
  0x2d   :  { %273 = vmatpush.msrb.mxu3 %v66_v59  ;;  %283 = vmatpush.msrb.mxu0 %v124_v62  ;;  %v402_v34 = vld [vmem:[#allocation5 + $0x190] sm:$0xff]  ;;  %v108_v35 = vld [vmem:[#allocation2 + $0x178] sm:$0xff]  ;;  %v146_v36 = vld [vmem:[#allocation2 + $0x2a8] sm:$0xff] }
  0x2e   :  { %343 = vmatpush.msrb.mxu2 %v160_v0  ;;  %205 = vmatpush.msra.mxu1 %v95_v2  ;;  %v368_v37 = vld [vmem:[#allocation5 + $0x80] sm:$0xff]  ;;  %v106_v39 = vld [vmem:[#allocation2 + $0x168] sm:$0xff]  ;;  %v144_v40 = vld [vmem:[#allocation2 + $0x298] sm:$0xff] }
  0x2f   :  { %274 = vmatpush.msrb.mxu3 %v64_v63  ;;  %284 = vmatpush.msrb.mxu0 %v122_v1  ;;  %v400_v38 = vld [vmem:[#allocation5 + $0x180] sm:$0xff]  ;;  %v366_v41 = vld [vmem:[#allocation5 + $0x70] sm:$0xff]  ;;  %v104_v43 = vld [vmem:[#allocation2 + $0x158] sm:$0xff] }
  0x30   :  { %344 = vmatpush.msrb.mxu2 %v158_v4  ;;  %791 = vmatmul.msk.f32.vlgmr.msra.gmra.mxu3 %vm161_vm0, %v942_v6  ;;  %v398_v42 = vld [vmem:[#allocation5 + $0x170] sm:$0xff]  ;;  %v142_v44 = vld [vmem:[#allocation2 + $0x288] sm:$0xff]  ;;  %v962_v45 = vld [vmem:[%s1143_s0 + $0x38] sm:$0xff] }
  0x31   :  { %275 = vmatpush.msrb.mxu3 %v62_v3  ;;  %230 = vmatmul.f32.vlgmr.msra.gmra.mxu2 %v937_v5  ;;  %v396_v46 = vld [vmem:[#allocation5 + $0x160] sm:$0xff]  ;;  %v102_v48 = vld [vmem:[#allocation2 + $0x148] sm:$0xff]  ;;  %v140_v49 = vld [vmem:[#allocation2 + $0x278] sm:$0xff] }
  0x32   :  { %475 = vmatpush.msra.mxu2 %v414_v8  ;;  %285 = vmatpush.msrb.mxu0 %v120_v9  ;;  %v364_v47 = vld [vmem:[#allocation5 + $0x60] sm:$0xff]  ;;  %v394_v50 = vld [vmem:[#allocation5 + $0x150] sm:$0xff]  ;;  %v100_v52 = vld [vmem:[#allocation2 + $0x138] sm:$0xff] }
  0x33   :  { %452 = vmatpush.msra.mxu3 %v382_v7  ;;  %206 = vmatpush.msra.mxu1 %v93_v10  ;;  %v362_v51 = vld [vmem:[#allocation5 + $0x50] sm:$0xff]  ;;  %v138_v53 = vld [vmem:[#allocation2 + $0x268] sm:$0xff]  ;;  %v360_v55 = vld [vmem:[#allocation5 + $0x40] sm:$0xff] }
  0x34   :  { %476 = vmatpush.msra.mxu2 %v412_v12  ;;  %286 = vmatpush.msrb.mxu0 %v118_v13  ;;  %v969_v54 = vld [vmem:[%s1143_s0 + $0x30] sm:$0xff]  ;;  %v392_v56 = vld [vmem:[#allocation5 + $0x140] sm:$0xff]  ;;  %v98_v57 = vld [vmem:[#allocation2 + $0x128] sm:$0xff] }
  0x35   :  { %453 = vmatpush.msra.mxu3 %v380_v11  ;;  %306 = vmatpush.msrb.mxu1 %v156_v14  ;;  %v136_v58 = vld [vmem:[#allocation2 + $0x258] sm:$0xff]  ;;  %v975_v59 = vld [vmem:[%s1143_s0 + $0x20] sm:$0xff]  ;;  %v358_v60 = vld [vmem:[#allocation5 + $0x30] sm:$0xff] }
  0x36   :  { %184 = vmatmul.f32.vlgmr.msra.gmra.mxu0 %v950_v15  ;;  %207 = vmatmul.f32.vlgmr.msra.gmra.mxu1 %v955_v16  ;;  %v390_v61 = vld [vmem:[#allocation5 + $0x130] sm:$0xff]  ;;  %v96_v62 = vld [vmem:[#allocation2 + $0x118] sm:$0xff]  ;;  %v134_v63 = vld [vmem:[#allocation2 + $0x248] sm:$0xff] }
  0x37   :  { %454 = vmatpush.msra.mxu3 %v378_v17  ;;  %477 = vmatpush.msra.mxu2 %v410_v18  ;;  %v981_v0 = vld [vmem:[%s1143_s0 + $0x28] sm:$0xff]  ;;  %v356_v1 = vld [vmem:[#allocation5 + $0x20] sm:$0xff]  ;;  %v132_v4 = vld [vmem:[#allocation2 + $0x238] sm:$0xff] }
  0x38   :  { %287 = vmatpush.msrb.mxu0 %v116_v19  ;;  %307 = vmatpush.msrb.mxu1 %v154_v20  ;;  %v388_v2 = vld [vmem:[#allocation5 + $0x120] sm:$0xff]  ;;  %v94_v3 = vld [vmem:[#allocation2 + $0x108] sm:$0xff]  ;;  %v354_v7 = vld [vmem:[#allocation5 + $0x10] sm:$0xff] }
  0x39   :  { %455 = vmatpush.msra.mxu3 %v376_v21  ;;  %478 = vmatpush.msra.mxu2 %v408_v22  ;;  %v386_v8 = vld [vmem:[#allocation5 + $0x110] sm:$0xff]  ;;  %v130_v10 = vld [vmem:[#allocation2 + $0x228] sm:$0xff]  ;;  %v352_v11 = vld [vmem:[#allocation5] sm:$0xff] }
  0x3a   :  { %288 = vmatpush.msrb.mxu0 %v114_v23  ;;  %308 = vmatpush.msrb.mxu1 %v152_v24  ;;  %v446_v9 = vld [vmem:[#allocation5 + $0x2f0] sm:$0xff]  ;;  %v384_v12 = vld [vmem:[#allocation5 + $0x100] sm:$0xff]  ;;  %v128_v14 = vld [vmem:[#allocation2 + $0x218] sm:$0xff] }
  0x3b   :  { %456 = vmatpush.msra.mxu3 %v374_v25  ;;  %479 = vmatpush.msra.mxu2 %v406_v26  ;;  %v444_v13 = vld [vmem:[#allocation5 + $0x2e0] sm:$0xff]  ;;  %v383_v17 = vld [vmem:[#allocation5 + $0xf8] sm:$0xff]  ;;  %v126_v19 = vld [vmem:[#allocation2 + $0x208] sm:$0xff] }
  0x3c   :  { %289 = vmatpush.msrb.mxu0 %v112_v27  ;;  %309 = vmatpush.msrb.mxu1 %v150_v28  ;;  %v447_v18 = vld [vmem:[#allocation5 + $0x2f8] sm:$0xff]  ;;  %v442_v20 = vld [vmem:[#allocation5 + $0x2d0] sm:$0xff]  ;;  %v381_v21 = vld [vmem:[#allocation5 + $0xe8] sm:$0xff] }
  0x3d   :  { %457 = vmatpush.msra.mxu3 %v372_v29  ;;  %480 = vmatpush.msra.mxu2 %v404_v30  ;;  %v445_v22 = vld [vmem:[#allocation5 + $0x2e8] sm:$0xff]  ;;  %v440_v23 = vld [vmem:[#allocation5 + $0x2c0] sm:$0xff]  ;;  %v450_v24 = vld [vmem:[#allocation5 + $0x310] sm:$0xff] }
  0x3e   :  { %290 = vmatpush.msrb.mxu0 %v110_v31  ;;  %310 = vmatpush.msrb.mxu1 %v148_v32  ;;  %v379_v25 = vld [vmem:[#allocation5 + $0xd8] sm:$0xff]  ;;  %v438_v27 = vld [vmem:[#allocation5 + $0x2b0] sm:$0xff]  ;;  %v448_v28 = vld [vmem:[#allocation5 + $0x300] sm:$0xff] }
  0x3f   :  { %458 = vmatpush.msra.mxu3 %v370_v33  ;;  %481 = vmatpush.msra.mxu2 %v402_v34  ;;  %v443_v26 = vld [vmem:[#allocation5 + $0x2d8] sm:$0xff]  ;;  %v377_v29 = vld [vmem:[#allocation5 + $0xc8] sm:$0xff]  ;;  %v436_v32 = vld [vmem:[#allocation5 + $0x2a0] sm:$0xff] }
  0x40   :  { %291 = vmatpush.msrb.mxu0 %v108_v35  ;;  %311 = vmatpush.msrb.mxu1 %v146_v36  ;;  %v415_v30 = vld [vmem:[#allocation5 + $0x1f8] sm:$0xff]  ;;  %v441_v31 = vld [vmem:[#allocation5 + $0x2c8] sm:$0xff]  ;;  %v434_v36 = vld [vmem:[#allocation5 + $0x290] sm:$0xff] }
  0x41   :  { %459 = vmatpush.msra.mxu3 %v368_v37  ;;  %482 = vmatpush.msra.mxu2 %v400_v38  ;;  %v375_v33 = vld [vmem:[#allocation5 + $0xb8] sm:$0xff]  ;;  %v413_v34 = vld [vmem:[#allocation5 + $0x1e8] sm:$0xff] }
  0x42   :  { %292 = vmatpush.msrb.mxu0 %v106_v39  ;;  %312 = vmatpush.msrb.mxu1 %v144_v40  ;;  %v439_v35 = vld [vmem:[#allocation5 + $0x2b8] sm:$0xff]  ;;  %v373_v37 = vld [vmem:[#allocation5 + $0xa8] sm:$0xff]  ;;  %v432_v40 = vld [vmem:[#allocation5 + $0x280] sm:$0xff] }
  0x43   :  { %460 = vmatpush.msra.mxu3 %v366_v41  ;;  %483 = vmatpush.msra.mxu2 %v398_v42  ;;  %v411_v38 = vld [vmem:[#allocation5 + $0x1d8] sm:$0xff]  ;;  %v437_v39 = vld [vmem:[#allocation5 + $0x2a8] sm:$0xff] }
  0x44   :  { %293 = vmatpush.msrb.mxu0 %v104_v43  ;;  %313 = vmatpush.msrb.mxu1 %v142_v44  ;;  %v371_v41 = vld [vmem:[#allocation5 + $0x98] sm:$0xff]  ;;  %v409_v42 = vld [vmem:[#allocation5 + $0x1c8] sm:$0xff]  ;;  %v430_v44 = vld [vmem:[#allocation5 + $0x270] sm:$0xff] }
  0x45   :  { %792 = vmatmul.msk.f32.gmra.mxu3 %vm161_vm0, %v962_v45  ;;  %484 = vmatpush.msra.mxu2 %v396_v46  ;;  %v435_v43 = vld [vmem:[#allocation5 + $0x298] sm:$0xff]  ;;  %v369_v46 = vld [vmem:[#allocation5 + $0x88] sm:$0xff] }
  0x46   :  { %461 = vmatpush.msra.mxu3 %v364_v47  ;;  %294 = vmatpush.msrb.mxu0 %v102_v48  ;;  %v407_v47 = vld [vmem:[#allocation5 + $0x1b8] sm:$0xff]  ;;  %v433_v48 = vld [vmem:[#allocation5 + $0x288] sm:$0xff] }
  0x47   :  { %314 = vmatpush.msrb.mxu1 %v140_v49  ;;  %485 = vmatpush.msra.mxu2 %v394_v50  ;;  %v428_v49 = vld [vmem:[#allocation5 + $0x260] sm:$0xff]  ;;  %v367_v50 = vld [vmem:[#allocation5 + $0x78] sm:$0xff] }
  0x48   :  { %462 = vmatpush.msra.mxu3 %v362_v51  ;;  %295 = vmatpush.msrb.mxu0 %v100_v52  ;;  %v405_v51 = vld [vmem:[#allocation5 + $0x1a8] sm:$0xff]  ;;  %v431_v52 = vld [vmem:[#allocation5 + $0x278] sm:$0xff] }
  0x49   :  { %315 = vmatpush.msrb.mxu1 %v138_v53  ;;  %233 = vmatmul.f32.gmra.mxu2 %v969_v54  ;;  %v426_v53 = vld [vmem:[#allocation5 + $0x250] sm:$0xff] }
  0x4a   :  { %463 = vmatpush.msra.mxu3 %v360_v55  ;;  %486 = vmatpush.msra.mxu2 %v392_v56  ;;  %v365_v55 = vld [vmem:[#allocation5 + $0x68] sm:$0xff]  ;;  %v403_v56 = vld [vmem:[#allocation5 + $0x198] sm:$0xff] }
  0x4b   :  { %296 = vmatpush.msrb.mxu0 %v98_v57  ;;  %316 = vmatpush.msrb.mxu1 %v136_v58  ;;  %v429_v57 = vld [vmem:[#allocation5 + $0x268] sm:$0xff]  ;;  %v424_v58 = vld [vmem:[#allocation5 + $0x240] sm:$0xff] }
  0x4c   :  { %187 = vmatmul.f32.gmra.mxu0 %v975_v59  ;;  %464 = vmatpush.msra.mxu3 %v358_v60  ;;  %v363_v60 = vld [vmem:[#allocation5 + $0x58] sm:$0xff] }
  0x4d   :  { %487 = vmatpush.msra.mxu2 %v390_v61  ;;  %297 = vmatpush.msrb.mxu0 %v96_v62  ;;  %v401_v61 = vld [vmem:[#allocation5 + $0x188] sm:$0xff]  ;;  %v427_v62 = vld [vmem:[#allocation5 + $0x258] sm:$0xff] }
  0x4e   :  { %317 = vmatpush.msrb.mxu1 %v134_v63  ;;  %276 = vmatmul.f32.vlgmr.msrb.gmra.mxu3 %v950_v15  ;;  %v422_v63 = vld [vmem:[#allocation5 + $0x230] sm:$0xff] }
  0x4f   :  { %210 = vmatmul.f32.gmra.mxu1 %v981_v0  ;;  %465 = vmatpush.msra.mxu3 %v356_v1  ;;  %v361_v1 = vld [vmem:[#allocation5 + $0x48] sm:$0xff] }
  0x50   :  { %488 = vmatpush.msra.mxu2 %v388_v2  ;;  %298 = vmatpush.msrb.mxu0 %v94_v3  ;;  %v399_v2 = vld [vmem:[#allocation5 + $0x178] sm:$0xff]  ;;  %v425_v3 = vld [vmem:[#allocation5 + $0x248] sm:$0xff] }
  0x51   :  { %318 = vmatpush.msrb.mxu1 %v132_v4  ;;  %466 = vmatpush.msra.mxu3 %v354_v7  ;;  %v420_v4 = vld [vmem:[#allocation5 + $0x220] sm:$0xff]  ;;  %v359_v7 = vld [vmem:[#allocation5 + $0x38] sm:$0xff] }
  0x52   :  { %489 = vmatpush.msra.mxu2 %v386_v8  ;;  %498 = vmatpush.msra.mxu0 %v446_v9  ;;  %v397_v8 = vld [vmem:[#allocation5 + $0x168] sm:$0xff]  ;;  %v423_v9 = vld [vmem:[#allocation5 + $0x238] sm:$0xff] }
  0x53   :  { %319 = vmatpush.msrb.mxu1 %v130_v10  ;;  %793 = vmatmul.msk.f32.vlgmr.msrb.gmra.mxu2 %vm161_vm0, %v942_v6  ;;  %v418_v10 = vld [vmem:[#allocation5 + $0x210] sm:$0xff] }
  0x54   :  { %467 = vmatpush.msra.mxu3 %v352_v11  ;;  %490 = vmatpush.msra.mxu2 %v384_v12  ;;  %v357_v11 = vld [vmem:[#allocation5 + $0x28] sm:$0xff]  ;;  %v395_v12 = vld [vmem:[#allocation5 + $0x158] sm:$0xff] }
  0x55   :  { %499 = vmatpush.msra.mxu0 %v444_v13  ;;  %320 = vmatpush.msrb.mxu1 %v128_v14  ;;  %v421_v13 = vld [vmem:[#allocation5 + $0x228] sm:$0xff]  ;;  %v416_v14 = vld [vmem:[#allocation5 + $0x200] sm:$0xff] }
  0x56   :  { %544 = vmatpush.msrb.mxu3 %v383_v17  ;;  %590 = vmatpush.msrb.mxu2 %v447_v18  ;;  %v355_v17 = vld [vmem:[#allocation5 + $0x18] sm:$0xff]  ;;  %v393_v18 = vld [vmem:[#allocation5 + $0x148] sm:$0xff] }
  0x57   :  { %299 = vmatmul.f32.vlgmr.msrb.gmra.mxu0 %v955_v16  ;;  %321 = vmatpush.msrb.mxu1 %v126_v19  ;;  %v419_v19 = vld [vmem:[#allocation5 + $0x218] sm:$0xff] }
  0x58   :  { %500 = vmatpush.msra.mxu0 %v442_v20  ;;  %545 = vmatpush.msrb.mxu3 %v381_v21  ;;  %v353_v20 = vld [vmem:[#allocation5 + $0x8] sm:$0xff]  ;;  %v391_v21 = vld [vmem:[#allocation5 + $0x138] sm:$0xff] }
  0x59   :  { %591 = vmatpush.msrb.mxu2 %v445_v22  ;;  %279 = vmatmul.f32.gmra.mxu3 %v975_v59  ;;  %v417_v22 = vld [vmem:[#allocation5 + $0x208] sm:$0xff] }
  0x5a   :  { %322 = vmatmul.f32.vlgmr.msrb.gmra.mxu1 %v937_v5  ;;  %501 = vmatpush.msra.mxu0 %v440_v23  ;;  %v389_v23 = vld [vmem:[#allocation5 + $0x128] sm:$0xff] }
  0x5b   :  { %535 = vmatpush.msra.mxu1 %v450_v24  ;;  %546 = vmatpush.msrb.mxu3 %v379_v25  ;;  %v451_v24 = vld [vmem:[#allocation5 + $0x318] sm:$0xff] }
  0x5c   :  { %592 = vmatpush.msrb.mxu2 %v443_v26  ;;  %502 = vmatpush.msra.mxu0 %v438_v27  ;;  %v387_v25 = vld [vmem:[#allocation5 + $0x118] sm:$0xff]  ;;  %v449_v26 = vld [vmem:[#allocation5 + $0x308] sm:$0xff] }
  0x5d   :  { %536 = vmatpush.msra.mxu1 %v448_v28  ;;  %547 = vmatpush.msrb.mxu3 %v377_v29  ;;  %v385_v27 = vld [vmem:[#allocation5 + $0x108] sm:$0xff]  ;;  %v656_v28 = vld [vmem:[%s1146_s3 + $0x40] sm:$0xff] }
  0x5e   :  { %593 = vmatpush.msrb.mxu2 %v441_v31  ;;  %503 = vmatpush.msra.mxu0 %v436_v32  ;;  %v655_v31 = vld [vmem:[%s1146_s3 + $0x38] sm:$0xff] }
  0x5f   :  { %567 = vmatpush.msrb.mxu1 %v415_v30  ;;  %794 = vmatmul.msk.f32.gmra.mxu2 %vm161_vm0, %v962_v45 }
  0x60   :  { %548 = vmatpush.msrb.mxu3 %v375_v33  ;;  %594 = vmatpush.msrb.mxu2 %v439_v35  ;;  %v654_v33 = vld [vmem:[%s1146_s3 + $0x30] sm:$0xff] }
  0x61   :  { %568 = vmatpush.msrb.mxu1 %v413_v34  ;;  %302 = vmatmul.f32.gmra.mxu0 %v981_v0  ;;  %v653_v34 = vld [vmem:[%s1146_s3 + $0x28] sm:$0xff] }
  0x62   :  { %504 = vmatpush.msra.mxu0 %v434_v36  ;;  %549 = vmatpush.msrb.mxu3 %v373_v37 }
  0x63   :  { %569 = vmatpush.msrb.mxu1 %v411_v38  ;;  %595 = vmatpush.msrb.mxu2 %v437_v39  ;;  %v652_v38 = vld [vmem:[%s1146_s3 + $0x20] sm:$0xff]  ;;  %v679_v39 = vld [vmem:[%s1146_s3 + $0xf8] sm:$0xff] }
  0x64   :  { %325 = vmatmul.f32.gmra.mxu1 %v969_v54  ;;  %505 = vmatpush.msra.mxu0 %v432_v40  ;;  %v651_v40 = vld [vmem:[%s1146_s3 + $0x18] sm:$0xff] }
  0x65   :  { %550 = vmatpush.msrb.mxu3 %v371_v41  ;;  %570 = vmatpush.msrb.mxu1 %v409_v42  ;;  %v678_v42 = vld [vmem:[%s1146_s3 + $0xf0] sm:$0xff] }
  0x66   :  { %596 = vmatpush.msrb.mxu2 %v435_v43  ;;  %506 = vmatpush.msra.mxu0 %v430_v44  ;;  %v650_v44 = vld [vmem:[%s1146_s3 + $0x10] sm:$0xff] }
  0x67   :  { %551 = vmatpush.msrb.mxu3 %v369_v46  ;;  %571 = vmatpush.msrb.mxu1 %v407_v47  ;;  %v677_v46 = vld [vmem:[%s1146_s3 + $0xe8] sm:$0xff] }
  0x68   :  { %597 = vmatpush.msrb.mxu2 %v433_v48  ;;  %468 = vmatmul.f32.vlgmr.msra.gmra.mxu3 %v950_v15  ;;  %v649_v47 = vld [vmem:[%s1146_s3 + $0x8] sm:$0xff]  ;;  %v676_v48 = vld [vmem:[%s1146_s3 + $0xe0] sm:$0xff] }
  0x69   :  { %491 = vmatmul.f32.vlgmr.msra.gmra.mxu2 %v955_v16  ;;  %507 = vmatpush.msra.mxu0 %v428_v49 }
  0x6a   :  { %552 = vmatpush.msrb.mxu3 %v367_v50  ;;  %572 = vmatpush.msrb.mxu1 %v405_v51  ;;  %v648_v50 = vld [vmem:[%s1146_s3] sm:$0xff]  ;;  %v675_v51 = vld [vmem:[%s1146_s3 + $0xd8] sm:$0xff] }
  0x6b   :  { %598 = vmatpush.msrb.mxu2 %v431_v52  ;;  %508 = vmatpush.msra.mxu0 %v426_v53  ;;  %v674_v53 = vld [vmem:[%s1146_s3 + $0xd0] sm:$0xff] }
  0x6c   :  { %553 = vmatpush.msrb.mxu3 %v365_v55  ;;  %573 = vmatpush.msrb.mxu1 %v403_v56  ;;  %v673_v56 = vld [vmem:[%s1146_s3 + $0xc8] sm:$0xff] }
  0x6d   :  { %599 = vmatpush.msrb.mxu2 %v429_v57  ;;  %509 = vmatpush.msra.mxu0 %v424_v58  ;;  %v672_v57 = vld [vmem:[%s1146_s3 + $0xc0] sm:$0xff] }
  0x6e   :  { %554 = vmatpush.msrb.mxu3 %v363_v60  ;;  %574 = vmatpush.msrb.mxu1 %v401_v61  ;;  %v671_v60 = vld [vmem:[%s1146_s3 + $0xb8] sm:$0xff] }
  0x6f   :  { %600 = vmatpush.msrb.mxu2 %v427_v62  ;;  %510 = vmatpush.msra.mxu0 %v422_v63  ;;  %v670_v62 = vld [vmem:[%s1146_s3 + $0xb0] sm:$0xff] }
  0x70   :  { %795 = vmatmul.msk.f32.vlgmr.msra.gmra.mxu1 %vm161_vm0, %v942_v6  ;;  %555 = vmatpush.msrb.mxu3 %v361_v1  ;;  %v669_v1 = vld [vmem:[%s1146_s3 + $0xa8] sm:$0xff] }
  0x71   :  { %575 = vmatpush.msrb.mxu1 %v399_v2  ;;  %601 = vmatpush.msrb.mxu2 %v425_v3  ;;  %v668_v2 = vld [vmem:[%s1146_s3 + $0xa0] sm:$0xff] }
  0x72   :  { %471 = vmatmul.f32.gmra.mxu3 %v975_v59  ;;  %494 = vmatmul.f32.gmra.mxu2 %v981_v0 }
  0x73   :  { %511 = vmatpush.msra.mxu0 %v420_v4  ;;  %556 = vmatpush.msrb.mxu3 %v359_v7 }
  0x74   :  { %576 = vmatpush.msrb.mxu1 %v397_v8  ;;  %602 = vmatpush.msrb.mxu2 %v423_v9  ;;  %v667_v8 = vld [vmem:[%s1146_s3 + $0x98] sm:$0xff] }
  0x75   :  { %512 = vmatpush.msra.mxu0 %v418_v10  ;;  %557 = vmatpush.msrb.mxu3 %v357_v11  ;;  %v666_v10 = vld [vmem:[%s1146_s3 + $0x90] sm:$0xff] }
  0x76   :  { %577 = vmatpush.msrb.mxu1 %v395_v12  ;;  %603 = vmatpush.msrb.mxu2 %v421_v13  ;;  %v665_v13 = vld [vmem:[%s1146_s3 + $0x88] sm:$0xff] }
  0x77   :  { %513 = vmatpush.msra.mxu0 %v416_v14  ;;  %558 = vmatpush.msrb.mxu3 %v355_v17  ;;  %v664_v17 = vld [vmem:[%s1146_s3 + $0x80] sm:$0xff] }
  0x78   :  { %514 = vmatmul.f32.vlgmr.msra.gmra.mxu0 %v937_v5  ;;  %578 = vmatpush.msrb.mxu1 %v393_v18 }
  0x79   :  { %604 = vmatpush.msrb.mxu2 %v419_v19  ;;  %796 = vmatmul.msk.f32.gmra.mxu1 %vm161_vm0, %v962_v45 }
  0x7a   :  { %559 = vmatpush.msrb.mxu3 %v353_v20  ;;  %579 = vmatpush.msrb.mxu1 %v391_v21 }
  0x7b   :  { %605 = vmatpush.msrb.mxu2 %v417_v22  ;;  %560 = vmatmul.f32.vlgmr.msrb.gmra.mxu3 %v950_v15  ;;  %v662_v15 = vld [vmem:[%s1146_s3 + $0x70] sm:$0xff] }
  0x7c   :  { %606 = vmatmul.f32.vlgmr.msrb.gmra.mxu2 %v937_v5  ;;  %580 = vmatpush.msrb.mxu1 %v389_v23  ;;  %v663_v5 = vld [vmem:[%s1146_s3 + $0x78] sm:$0xff] }
  0x7d   :  { %627 = vmatpush.msra.mxu2 %v451_v24  ;;  %680 = vmatpush.msra.mxu3 %v663_v5 }
  0x7e   :  { %581 = vmatpush.msrb.mxu1 %v387_v25  ;;  %703 = vmatpush.msrb.mxu0 %v679_v39 }
  0x7f   :  { %628 = vmatpush.msra.mxu2 %v449_v26  ;;  %681 = vmatpush.msra.mxu3 %v662_v15 }
  0x80   :  { %517 = vmatmul.f32.gmra.mxu0 %v969_v54  ;;  %582 = vmatpush.msrb.mxu1 %v385_v27 }
  0x81   :  { %583 = vmatmul.f32.vlgmr.msrb.gmra.mxu1 %v955_v16  ;;  %v661_v16 = vld [vmem:[%s1146_s3 + $0x68] sm:$0xff]  ;;  %704 = vmatpush.msrb.mxu0 %v678_v42 }
  0x82   :  { %682 = vmatpush.msra.mxu3 %v661_v16 }
  0x83   :  { %563 = vmatmul.f32.gmra.mxu3 %v975_v59  ;;  %v658_v59 = vld [vmem:[%s1146_s3 + $0x50] sm:$0xff]  ;;  %705 = vmatpush.msrb.mxu0 %v677_v46 }
  0x84   :  { %609 = vmatmul.f32.gmra.mxu2 %v969_v54  ;;  %v659_v54 = vld [vmem:[%s1146_s3 + $0x58] sm:$0xff] }
  0x85   :  { %706 = vmatpush.msrb.mxu0 %v676_v48 }
  0x87   :  { %707 = vmatpush.msrb.mxu0 %v675_v51 }
  0x89   :  { %586 = vmatmul.f32.gmra.mxu1 %v981_v0  ;;  %v657_v0 = vld [vmem:[%s1146_s3 + $0x48] sm:$0xff]  ;;  %708 = vmatpush.msrb.mxu0 %v674_v53 }
  0x8b   :  { %709 = vmatpush.msrb.mxu0 %v673_v56 }
  0x8c   :  { %797 = vmatmul.msk.f32.vlgmr.msra.gmra.mxu2 %vm161_vm0, %v942_v6  ;;  %v660_v6 = vld [vmem:[%s1146_s3 + $0x60] sm:$0xff] }
  0x8d   :  { %683 = vmatpush.msra.mxu3 %v660_v6  ;;  %710 = vmatpush.msrb.mxu0 %v672_v57 }
  0x8f   :  { %684 = vmatpush.msra.mxu3 %v659_v54  ;;  %711 = vmatpush.msrb.mxu0 %v671_v60  ;;  %v734_v60 = vld [vmem:[%s1147_s4 + $0x10] sm:$0x7f] }
  0x90   :  { %799 = vmatpush.msk.msra.mxu1 %vm742_vm1, %v734_v60 }
  0x91   :  { %685 = vmatpush.msra.mxu3 %v658_v59  ;;  %712 = vmatpush.msrb.mxu0 %v670_v62 }
  0x93   :  { %686 = vmatpush.msra.mxu3 %v657_v0  ;;  %713 = vmatpush.msrb.mxu0 %v669_v1 }
  0x94   :  { %798 = vmatmul.msk.f32.gmra.mxu2 %vm161_vm0, %v962_v45 }
  0x95   :  { %687 = vmatpush.msra.mxu3 %v656_v28  ;;  %714 = vmatpush.msrb.mxu0 %v668_v2 }
  0x97   :  { %688 = vmatpush.msra.mxu3 %v655_v31  ;;  %715 = vmatpush.msrb.mxu0 %v667_v8 }
  0x99   :  { %689 = vmatpush.msra.mxu3 %v654_v33  ;;  %716 = vmatpush.msrb.mxu0 %v666_v10 }
  0x9b   :  { %690 = vmatpush.msra.mxu3 %v653_v34  ;;  %717 = vmatpush.msrb.mxu0 %v665_v13 }
  0x9d   :  { %691 = vmatpush.msra.mxu3 %v652_v38  ;;  %718 = vmatpush.msrb.mxu0 %v664_v17 }
  0x9f   :  { %692 = vmatpush.msra.mxu3 %v651_v40 }
  0xa1   :  { %693 = vmatpush.msra.mxu3 %v650_v44 }
  0xa3   :  { %694 = vmatpush.msra.mxu3 %v649_v47 }
  0xa5   :  { %695 = vmatpush.msra.mxu3 %v648_v50 }
  0xb3   :  { %v1040_v29 = vpop.f32.mrf.mxu3  ;;  %v208_v30 = vpop.f32.mrf.mxu1 }
  0xb4   :  { %v1026_v45 = vpop.f32.mrf.mxu2  ;;  %v185_v35 = vpop.f32.mrf.mxu0 }
  0xb5   :  { %v209_v7 = vadd.f32 %v208_v30, %v185_v35 }
  0xb7   :  { %v232_v12 = vadd.f32 %v1026_v45, %v209_v7 }
  0xb9   :  { %v255_v19 = vadd.f32 %v1040_v29, %v232_v12 }
  0xbb   :  { %v636_v25 = vmul.f32 %v255_v19, %v255_v19 }
  0xc8   :  { %v1053_v36 = vpop.f32.mrf.mxu3 }
  0xc9   :  { %v188_v43 = vpop.f32.mrf.mxu0 }
  0xcc   :  { %v1045_v32 = vpop.f32.mrf.mxu2  ;;  %v211_v37 = vpop.f32.mrf.mxu1 }
  0xcd   :  { %v212_v20 = vadd.f32 %v211_v37, %v188_v43 }
  0xcf   :  { %v235_v26 = vadd.f32 %v1045_v32, %v212_v20 }
  0xd1   :  { %v1081_v49 = vpop.f32.mrf.mxu3  ;;  %v258_v45 = vadd.f32 %v1053_v36, %v235_v26 }
  0xd3   :  { %v638_v28 = vmul.f32 %v258_v45, %v258_v45 }
  0xd4   :  { %v300_v58 = vpop.f32.mrf.mxu0 }
  0xd5   :  { %v301_v34 = vadd.f32 %v300_v58, %v1081_v49 }
  0xd6   :  { %v1064_v41 = vpop.f32.mrf.mxu2 }
  0xd7   :  { %v323_v52 = vpop.f32.mrf.mxu1 }
  0xd8   :  { %v324_v35 = vadd.f32 %v323_v52, %v301_v34 }
  0xda   :  { %v347_v38 = vadd.f32 %v1064_v41, %v324_v35 }
  0xdc   :  { %v280_v61 = vpop.f32.mrf.mxu3  ;;  %v637_v46 = vmul.f32 %v347_v38, %v347_v38 }
  0xde   :  { %v303_v4 = vpop.f32.mrf.mxu0 }
  0xdf   :  { %v304_v39 = vadd.f32 %v303_v4, %v280_v61  ;;  %v733_v61 = vld [vmem:[%s1147_s4 + $0x8] sm:$0xff] }
  0xe0   :  { %760 = vmatpush.msra.mxu1 %v733_v61 }
  0xe1   :  { %v326_v63 = vpop.f32.mrf.mxu1 }
  0xe2   :  { %v1092_v55 = vpop.f32.mrf.mxu2  ;;  %v327_v47 = vadd.f32 %v326_v63, %v304_v39 }
  0xe4   :  { %v350_v53 = vadd.f32 %v1092_v55, %v327_v47  ;;  %v732_v55 = vld [vmem:[%s1147_s4] sm:$0xff]  ;;  %s895_s4 = smov [#allocation7]  }
  0xe5   :  { %761 = vmatpush.msra.mxu1 %v732_v55  ;;  %s775_s2 = sshll.u32 %s895_s4, 4  ;;  %s776_s2 = int_to_ptr.vmem [resolvable:$true] %s775_s2 }
  0xe6   :  { %v639_v57 = vmul.f32 %v350_v53, %v350_v53 }
  0xeb   :  { %v469_v9 = vpop.f32.mrf.mxu3 }
  0xec   :  { %v492_v3 = vpop.f32.mrf.mxu2 }
  0xed   :  { %v538_v11 = vpop.f32.mrf.mxu1  ;;  %v493_v14 = vadd.f32 %v492_v3, %v469_v9 }
  0xf5   :  { %v515_v18 = vpop.f32.mrf.mxu0  ;;  %v495_v22 = vpop.f32.mrf.mxu2 }
  0xf6   :  { %v516_v21 = vadd.f32 %v515_v18, %v493_v14  ;;  %v472_v24 = vpop.f32.mrf.mxu3  ;;  %v541_v5 = vpop.f32.mrf.mxu1 }
  0xf7   :  { %v496_v16 = vadd.f32 %v495_v22, %v472_v24 }
  0xf8   :  { %v539_v23 = vadd.f32 %v538_v11, %v516_v21 }
  0xfa   :  { %v640_v27 = vmul.f32 %v539_v23, %v539_v23 }
  0xfc   :  { %v644_v15 = vadd.f32 %v640_v27, %v636_v25 }
  0xfd   :  { %v518_v6 = vpop.f32.mrf.mxu0 }
  0xfe   :  { %v519_v54 = vadd.f32 %v518_v6, %v496_v16  ;;  %696 = vmatmul.f32.vlgmr.msra.gmra.mxu3 %v644_v15  ;;  %v561_v30 = vpop.f32.mrf.mxu3  ;;  %v584_v33 = vpop.f32.mrf.mxu1 }
  0xff   :  { %v607_v59 = vpop.f32.mrf.mxu2  ;;  %v585_v37 = vadd.f32 %v584_v33, %v561_v30 }
 0x100   :  { %v542_v0 = vadd.f32 %v541_v5, %v519_v54 }
 0x101   :  { %v608_v40 = vadd.f32 %v607_v59, %v585_v37 }
 0x102   :  { %v642_v29 = vmul.f32 %v542_v0, %v542_v0 }
 0x104   :  { %v646_v31 = vadd.f32 %v642_v29, %v638_v28 }
 0x106   :  { %699 = vmatmul.f32.gmra.mxu3 %v646_v31  ;;  %v564_v36 = vpop.f32.mrf.mxu3  ;;  %v587_v42 = vpop.f32.mrf.mxu1 }
 0x107   :  { %v610_v32 = vpop.f32.mrf.mxu2  ;;  %v588_v48 = vadd.f32 %v587_v42, %v564_v36 }
 0x109   :  { %v611_v49 = vadd.f32 %v610_v32, %v588_v48 }
 0x10f   :  { %v630_v43 = vpop.f32.mrf.mxu2 }
 0x110   :  { %v631_v44 = vadd.f32 %v630_v43, %v608_v40 }
 0x112   :  { %v641_v50 = vmul.f32 %v631_v44, %v631_v44 }
 0x114   :  { %v645_v51 = vadd.f32 %v641_v50, %v637_v46 }
 0x116   :  { %719 = vmatmul.f32.vlgmr.msrb.gmra.mxu0 %v645_v51 }
 0x117   :  { %v633_v56 = vpop.f32.mrf.mxu2 }
 0x118   :  { %v634_v52 = vadd.f32 %v633_v56, %v611_v49 }
 0x11a   :  { %v643_v58 = vmul.f32 %v634_v52, %v634_v52 }
 0x11c   :  { %v647_v41 = vadd.f32 %v643_v58, %v639_v57 }
 0x11e   :  { %722 = vmatmul.f32.gmra.mxu0 %v647_v41 }
 0x181   :  { %v697_v62 = vpop.f32.mrf.mxu3 }
 0x189   :  { %v700_v3 = vpop.f32.mrf.mxu3 }
 0x193   :  { %v720_v63 = vpop.f32.mrf.mxu0 }
 0x194   :  { %v721_v1 = vadd.f32 %v720_v63, %v697_v62 }
 0x196   :  { %v726_v2 = vmax.f32 %v721_v1, 1.1920929e-07 }
 0x198   :  { %809 = vlog2.f32 %v726_v2 }
 0x19b   :  { %v723_v4 = vpop.f32.mrf.mxu0 }
 0x19c   :  { %v724_v7 = vadd.f32 %v723_v4, %v700_v3 }
 0x19e   :  { %v810_v8 = vpop.eup %809  ;;  %v727_v9 = vmax.f32 %v724_v7, 1.1920929e-07 }
 0x19f   :  { %v729_v10 = vmul.f32 0.6931472, %v810_v8 }
 0x1a0   :  { %811 = vlog2.f32 %v727_v9 }
 0x1a1   :  { %800 = vmatmul.msk.f32.vlgmr.msra.gmra.mxu1 %vm735_vm2, %v729_v10 }
 0x1a6   :  { %v812_v11 = vpop.eup %811 }
 0x1a7   :  { %v731_v12 = vmul.f32 0.6931472, %v812_v11 }
 0x1a9   :  { %801 = vmatmul.msk.f32.gmra.mxu1 %vm735_vm2, %v731_v12 }
 0x21e   :  { %v763_v13 = vpop.f32.mrf.mxu1 }
 0x21f   :  { %769 = vst [vmem:[#allocation7] sm:$0xff] %v763_v13 }
 0x226   :  { %v766_v14 = vpop.f32.mrf.mxu1 }
 0x227   :  { %770 = vst [vmem:[#allocation7 + $0x8] sm:$0xff] %v766_v14 }
 0x228   :  { %783 = dma.vmem_to_hbm [thread:$0]  %s776_s2, 256, %s778_s7, [#allocation4], %s896_s8, %s896_s8, %s897_s9  }
 0x229   :  { %889 = dma.done.wait [#allocation4], 256  }
 0x22a   :  { %890 = vsyncadd [#allocation4], 4294967040 }
 0x22b   :  { %788 = vsyncpa [#allocation3], 1 }
 0x22c   :  { %789 = vsyncpa [#allocation6], 1 }
 0x22d   :  { %790 = vsyncpa [#allocation4], 1 }

</bundles_post_ra>
